<compile_context>
chip_gen: v7x
topology: tpu7x:2x2x1
jax: 0.10.0
libtpu: 0.0.40
codegen_flags: <defaults>
</compile_context>

<pallas_src>
import numpy as np
import jax
import jax.numpy as jnp
from jax.experimental import pallas as pl
from jax.experimental.pallas import tpu as pltpu

DIV_FLOW = 0.05
WEIGHTS = (0.32, 0.16, 0.08)


def bilinear_matrix(out_size: int, in_size: int) -> np.ndarray:
    """Row-interpolation matrix reproducing F.interpolate(..., mode='bilinear',
    align_corners=False) along one spatial axis. Shape (out_size, in_size)."""
    W = np.zeros((out_size, in_size), dtype=np.float32)
    if out_size == in_size:
        np.fill_diagonal(W, 1.0)
        return W
    scale = in_size / out_size
    dst = np.arange(out_size, dtype=np.float64)
    src = (dst + 0.5) * scale - 0.5
    src = np.maximum(src, 0.0)                      # PyTorch clamps negatives
    x0 = np.floor(src).astype(np.int64)
    x0 = np.minimum(x0, in_size - 1)
    x1 = np.minimum(x0 + 1, in_size - 1)
    lam = (src - x0).astype(np.float32)
    rows = np.arange(out_size)
    np.add.at(W, (rows, x0), 1.0 - lam)
    np.add.at(W, (rows, x1), lam)
    return W


def _ceil_to(x: int, m: int) -> int:
    return -(-int(x) // m) * m


def _vmem_tile_bytes(shape, itemsize=4):
    """Conservative VMEM footprint of a block, accounting for (8,128) tiling."""
    shape = tuple(int(s) for s in shape)
    lead = int(np.prod(shape[:-2], dtype=np.int64)) if len(shape) > 2 else 1
    sub = shape[-2] if len(shape) >= 2 else 1
    lane = shape[-1]
    return lead * _ceil_to(sub, 8) * _ceil_to(lane, 128) * itemsize


def _tpu_vmem_capacity():
    try:
        cap = int(pltpu.get_tpu_info().vmem_capacity_bytes)
        if cap > 0:
            return cap
    except Exception:
        pass
    return None


def _num_tensorcores():
    """Best-effort TensorCore count (v7x has 2 per chip); defaults to 1."""
    n = 1
    try:
        info = pltpu.get_tpu_info()
        for attr in ("num_cores", "core_count", "tensorcore_count"):
            v = getattr(info, attr, None)
            if isinstance(v, int) and v > 0:
                n = max(n, v)
    except Exception:
        pass
    try:
        dev = jax.devices()[0]
        for attr in ("num_cores", "core_count"):
            v = getattr(dev, attr, None)
            if isinstance(v, int) and v > 0:
                n = max(n, v)
    except Exception:
        pass
    return n


def _pick_chunk_size(NC, Hin, Win, out_hw, hs_pad, budget_bytes, min_chunks):
    """Largest divisor B of the fused N*C axis whose per-grid-step working set
    fits the VMEM budget; prefer B such that NC//B >= min_chunks so a
    multi-TensorCore part (v7x) can shard the 'parallel' grid axis."""
    def step_bytes(B):
        io = _vmem_tile_bytes((B, Hin, Win))
        io += sum(_vmem_tile_bytes((B, ho, wo)) for ho, wo in out_hw)
        io += _vmem_tile_bytes((1, 128))                       # per-chunk partial-sum row
        const = _vmem_tile_bytes((hs_pad, Hin))
        const += sum(_vmem_tile_bytes((Win, wo)) for _, wo in out_hw)
        tmp = _vmem_tile_bytes((hs_pad, Win))
        tmp += 3 * sum(_vmem_tile_bytes((ho, wo)) for ho, wo in out_hw)
        # Pallas double-buffers every pipelined operand (inputs, outputs AND the
        # tiny constants) by default -> count 2x for all of them.
        return 2 * (io + const) + tmp

    divisors = [d for d in range(1, NC + 1) if NC % d == 0]
    fitting = [B for B in divisors if step_bytes(B) <= budget_bytes]
    if not fitting:
        return 1
    sharded = [B for B in fitting if NC // B >= min_chunks]
    return max(sharded) if sharded else max(fitting)


def _make_kernel(out_hw, h_offsets):
    """Build the fused kernel for exactly 3 scales (module defines 3 weights)."""

    def kernel(t_ref, o0_ref, o1_ref, o2_ref, wh_ref, w0_ref, w1_ref, w2_ref, e_ref):
        o_refs = (o0_ref, o1_ref, o2_ref)
        # Tiny constants (a few KiB): hoist once per grid step.
        wh = wh_ref[...]                                  # (Hs_pad, Hin), DIV_FLOW folded in
        wwts = (w0_ref[...], w1_ref[...], w2_ref[...])    # (Win, Wo_s)
        B = t_ref.shape[0]

        def plane(p, acc):
            # One (n,c) plane at a time: refs indexed directly (no big hoisted value).
            t = t_ref[p].astype(jnp.float32)                                    # (Hin, Win)
            # Stage 1: stacked row (H) interpolation — single MXU matmul for all scales.
            tmp = jnp.dot(wh, t, preferred_element_type=jnp.float32)            # (Hs_pad, Win)
            new_acc = []
            for s, (ho, wo) in enumerate(out_hw):
                off = h_offsets[s]
                # Stage 2: column (W) interpolation — plain (Ho, Win) @ (Win, Wo).
                r = jnp.dot(tmp[off:off + ho, :], wwts[s],
                            preferred_element_type=jnp.float32)                 # (Ho, Wo)
                d = r - o_refs[s][p].astype(jnp.float32)
                # torch.norm(..., p=2, dim=1) after NHWC permute == L2 norm over H.
                sq = jnp.sum(d * d, axis=0, keepdims=True)                       # (1, Wo)
                part = jnp.sum(jnp.sqrt(sq), axis=1, keepdims=True)              # (1, 1)
                new_acc.append(acc[s] + part)
            return tuple(new_acc)

        init = tuple(jnp.zeros((1, 1), jnp.float32) for _ in out_hw)
        sums = jax.lax.fori_loop(0, B, plane, init)

        # Single lane-dense (1,128) store per grid step: lanes 0..2 = per-scale sums.
        lane = jax.lax.broadcasted_iota(jnp.int32, (1, 128), 1)
        row = jnp.zeros((1, 128), jnp.float32)
        for s in range(len(out_hw)):
            row = row + jnp.where(lane == s, sums[s], jnp.float32(0.0))
        e_ref[...] = row

    return kernel


def multiscale_loss(outputs, target):
    """Mirrors MultiscaleLoss.forward: returns [epevalue]."""
    assert len(outputs) == 3, "module defines weights for exactly 3 scales"
    N, C, Hin, Win = target.shape
    NC = N * C
    out_hw = [(int(o.shape[2]), int(o.shape[3])) for o in outputs]

    # Stacked, DIV_FLOW-folded row-interp matrices; each per-scale block is
    # padded to a multiple of 8 rows so per-scale slices stay sublane-aligned.
    wh_blocks, h_offsets, off = [], [], 0
    for ho, _ in out_hw:
        ho_pad = _ceil_to(ho, 8)
        blk = np.zeros((ho_pad, Hin), np.float32)
        blk[:ho] = np.float32(DIV_FLOW) * bilinear_matrix(ho, Hin)
        wh_blocks.append(blk)
        h_offsets.append(off)
        off += ho_pad
    hs_pad = off
    wh_all = jnp.asarray(np.concatenate(wh_blocks, axis=0))                # (Hs_pad, Hin)
    wwts = [jnp.asarray(bilinear_matrix(wo, Win).T) for _, wo in out_hw]   # (Win, Wo_s)

    # Free reshapes only — no HBM relayout pass before the kernel.
    t_nc = target.reshape(NC, Hin, Win)
    o_nc = [o.reshape(NC, ho, wo) for o, (ho, wo) in zip(outputs, out_hw)]
    # TODO(synk): if activations are available in bf16, pass them through as-is
    # (the kernel already upcasts per-plane to f32) to halve HBM bytes on v6e/v7x.

    # Generation-aware VMEM budgeting + multi-core-aware chunking.
    cap = _tpu_vmem_capacity()
    vmem_limit = None if cap is None else int(min(cap * 3 // 4, 96 << 20))
    budget = (vmem_limit // 2) if vmem_limit is not None else (12 << 20)
    min_chunks = _num_tensorcores()
    B = _pick_chunk_size(NC, Hin, Win, out_hw, hs_pad, budget, min_chunks)
    num_chunks = NC // B

    in_specs = [pl.BlockSpec((B, Hin, Win), lambda i: (i, 0, 0))]
    in_specs += [pl.BlockSpec((B, ho, wo), lambda i: (i, 0, 0)) for ho, wo in out_hw]
    # Interp constants are a few KiB each, so default double-buffering is
    # immaterial (and is accounted for in the VMEM budget above).
    in_specs += [pl.BlockSpec((hs_pad, Hin), lambda i: (0, 0))]
    in_specs += [pl.BlockSpec((Win, wo), lambda i: (0, 0)) for _, wo in out_hw]

    out_spec = pl.BlockSpec((None, 1, 128), lambda i: (i, 0, 0))
    out_shape = jax.ShapeDtypeStruct((num_chunks, 1, 128), jnp.float32)

    cp_kwargs = dict(dimension_semantics=("parallel",))
    if vmem_limit is not None:
        cp_kwargs["vmem_limit_bytes"] = vmem_limit
    compiler_params = pltpu.CompilerParams(**cp_kwargs)

    partial_sums = pl.pallas_call(
        _make_kernel(tuple(out_hw), tuple(h_offsets)),
        out_shape=out_shape,
        grid_spec=pltpu.PrefetchScalarGridSpec(
            num_scalar_prefetch=0,
            grid=(num_chunks,),
            in_specs=in_specs,
            out_specs=out_spec,
        ),
        compiler_params=compiler_params,
    )(t_nc, *o_nc, wh_all, *wwts)

    # Tiny epilogue in XLA: per-scale mean over (N, W, C), then weighted sum.
    epe = jnp.zeros((), jnp.float32)
    for s, (w, (_, wo)) in enumerate(zip(WEIGHTS, out_hw)):
        epe = epe + jnp.float32(w) * jnp.sum(partial_sums[:, 0, s]) / jnp.float32(N * C * wo)
    return [epe]


def _reference_loss(outputs, target):
    """Pure numpy reference of the same forward semantics (f64)."""
    target = DIV_FLOW * np.asarray(target, dtype=np.float64)
    epe = 0.0
    for i, out_ in enumerate(outputs):
        out_np = np.asarray(out_, dtype=np.float64)
        N, C, Ho, Wo = out_np.shape
        Wh = bilinear_matrix(Ho, target.shape[2]).astype(np.float64)
        Ww = bilinear_matrix(Wo, target.shape[3]).astype(np.float64)
        t_int = np.einsum('oh,nchw,pw->ncop', Wh, target, Ww)
        diff = t_int - out_np                           # NCHW
        norm_h = np.sqrt(np.sum(diff * diff, axis=2))   # (N, C, Wo) — norm over H
        epe += WEIGHTS[i] * norm_h.mean()
    return epe


if __name__ == "__main__":
    key = jax.random.PRNGKey(0)
    k_t, k0, k1, k2 = jax.random.split(key, 4)

    N, C, H, W = 2, 4, 16, 16
    target = jax.random.normal(k_t, (N, C, H, W), dtype=jnp.float32)
    outputs = [
        jax.random.normal(k0, (N, C, 16, 16), dtype=jnp.float32),
        jax.random.normal(k1, (N, C, 8, 8), dtype=jnp.float32),
        jax.random.normal(k2, (N, C, 4, 4), dtype=jnp.float32),
    ]

    loss_fn = jax.jit(multiscale_loss)
    result = loss_fn(outputs, target)
    loss = jax.block_until_ready(result[0])

    ref = _reference_loss([np.asarray(o) for o in outputs], np.asarray(target))
    assert np.allclose(float(loss), ref, rtol=1e-4, atol=1e-5), (float(loss), ref)

    print("KERNEL_OK")
</pallas_src>

<mosaic_0001>
module attributes {stable_mosaic.version = 11 : i64} {
  func.func @kernel(%arg0: i32, %arg1: memref<8x16x16xf32, #tpu.memory_space<vmem>>, %arg2: memref<8x16x16xf32, #tpu.memory_space<vmem>>, %arg3: memref<8x8x8xf32, #tpu.memory_space<vmem>>, %arg4: memref<8x4x4xf32, #tpu.memory_space<vmem>>, %arg5: memref<32x16xf32, #tpu.memory_space<vmem>>, %arg6: memref<16x16xf32, #tpu.memory_space<vmem>>, %arg7: memref<16x8xf32, #tpu.memory_space<vmem>>, %arg8: memref<16x4xf32, #tpu.memory_space<vmem>>, %arg9: memref<1x1x128xf32, #tpu.memory_space<vmem>>) attributes {dimension_semantics = [#tpu.dimension_semantics<parallel>], iteration_bounds = array<i64: 1>, scalar_prefetch = 0 : i64, scratch_operands = 0 : i64, tpu.core_type = #tpu.core_type<tc>, window_params = [{transform_indices = @transform_0, window_bounds = array<i64: 8, 16, 16>}, {transform_indices = @transform_1, window_bounds = array<i64: 8, 16, 16>}, {transform_indices = @transform_2, window_bounds = array<i64: 8, 8, 8>}, {transform_indices = @transform_3, window_bounds = array<i64: 8, 4, 4>}, {pipeline_mode = #tpu.pipeline_mode<synchronous>, transform_indices = @transform_4, window_bounds = array<i64: 32, 16>}, {pipeline_mode = #tpu.pipeline_mode<synchronous>, transform_indices = @transform_5, window_bounds = array<i64: 16, 16>}, {pipeline_mode = #tpu.pipeline_mode<synchronous>, transform_indices = @transform_6, window_bounds = array<i64: 16, 8>}, {pipeline_mode = #tpu.pipeline_mode<synchronous>, transform_indices = @transform_7, window_bounds = array<i64: 16, 4>}, {transform_indices = @transform_8, window_bounds = array<i64: 1, 1, 128>}]} {
    %c0 = arith.constant 0 : index
    %c0_0 = arith.constant 0 : index
    %0 = vector.load %arg5[%c0, %c0_0] : memref<32x16xf32, #tpu.memory_space<vmem>>, vector<32x16xf32>
    %c0_1 = arith.constant 0 : index
    %c0_2 = arith.constant 0 : index
    %1 = vector.load %arg6[%c0_1, %c0_2] : memref<16x16xf32, #tpu.memory_space<vmem>>, vector<16x16xf32>
    %c0_3 = arith.constant 0 : index
    %c0_4 = arith.constant 0 : index
    %2 = vector.load %arg7[%c0_3, %c0_4] : memref<16x8xf32, #tpu.memory_space<vmem>>, vector<16x8xf32>
    %c0_5 = arith.constant 0 : index
    %c0_6 = arith.constant 0 : index
    %3 = vector.load %arg8[%c0_5, %c0_6] : memref<16x4xf32, #tpu.memory_space<vmem>>, vector<16x4xf32>
    %cst = arith.constant 0.000000e+00 : f32
    %4 = vector.broadcast %cst : f32 to vector<1x1xf32>
    %cst_7 = arith.constant 0.000000e+00 : f32
    %5 = vector.broadcast %cst_7 : f32 to vector<1x1xf32>
    %cst_8 = arith.constant 0.000000e+00 : f32
    %6 = vector.broadcast %cst_8 : f32 to vector<1x1xf32>
    %c0_i32 = arith.constant 0 : i32
    %c8_i32 = arith.constant 8 : i32
    %7 = arith.addi %c0_i32, %c8_i32 : i32
    %c1_i32 = arith.constant 1 : i32
    %8:3 = scf.for %arg10 = %c0_i32 to %7 step %c1_i32 iter_args(%arg11 = %4, %arg12 = %5, %arg13 = %6) -> (vector<1x1xf32>, vector<1x1xf32>, vector<1x1xf32>)  : i32 {
      %35 = arith.index_cast %arg10 : i32 to index
      %c0_19 = arith.constant 0 : index
      %c0_20 = arith.constant 0 : index
      %36 = vector.load %arg1[%35, %c0_19, %c0_20] : memref<8x16x16xf32, #tpu.memory_space<vmem>>, vector<1x16x16xf32>
      %37 = vector.shape_cast %36 : vector<1x16x16xf32> to vector<16x16xf32>
      %cst_21 = arith.constant dense<0.000000e+00> : vector<32x16xf32>
      %38 = tpu.matmul %0, %37, %cst_21 {dimension_numbers = #tpu.dot_dimension_numbers<[1], [0], [0], [1], [0, 0, 1, 1], [], []>} : vector<32x16xf32>, vector<16x16xf32>, vector<32x16xf32> -> vector<32x16xf32>
      %39 = vector.extract_strided_slice %38 {offsets = [0, 0], sizes = [16, 16], strides = [1, 1]} : vector<32x16xf32> to vector<16x16xf32>
      %cst_22 = arith.constant dense<0.000000e+00> : vector<16x16xf32>
      %40 = tpu.matmul %39, %1, %cst_22 {dimension_numbers = #tpu.dot_dimension_numbers<[1], [0], [0], [1], [0, 0, 1, 1], [], []>} : vector<16x16xf32>, vector<16x16xf32>, vector<16x16xf32> -> vector<16x16xf32>
      %41 = arith.index_cast %arg10 : i32 to index
      %c0_23 = arith.constant 0 : index
      %c0_24 = arith.constant 0 : index
      %42 = vector.load %arg2[%41, %c0_23, %c0_24] : memref<8x16x16xf32, #tpu.memory_space<vmem>>, vector<1x16x16xf32>
      %43 = vector.shape_cast %42 : vector<1x16x16xf32> to vector<16x16xf32>
      %44 = arith.subf %40, %43 : vector<16x16xf32>
      %45 = arith.mulf %44, %44 : vector<16x16xf32>
      %cst_25 = arith.constant dense<0.000000e+00> : vector<16xf32>
      %46 = vector.multi_reduction <add>, %45, %cst_25 [0] : vector<16x16xf32> to vector<16xf32>
      %47 = vector.shape_cast %46 : vector<16xf32> to vector<1x16xf32>
      %48 = math.sqrt %47 : vector<1x16xf32>
      %cst_26 = arith.constant dense<0.000000e+00> : vector<1xf32>
      %49 = vector.multi_reduction <add>, %48, %cst_26 [1] : vector<1x16xf32> to vector<1xf32>
      %50 = vector.shape_cast %49 : vector<1xf32> to vector<1x1xf32>
      %51 = arith.addf %arg11, %50 : vector<1x1xf32>
      %52 = vector.extract_strided_slice %38 {offsets = [16, 0], sizes = [8, 16], strides = [1, 1]} : vector<32x16xf32> to vector<8x16xf32>
      %cst_27 = arith.constant dense<0.000000e+00> : vector<8x8xf32>
      %53 = tpu.matmul %52, %2, %cst_27 {dimension_numbers = #tpu.dot_dimension_numbers<[1], [0], [0], [1], [0, 0, 1, 1], [], []>} : vector<8x16xf32>, vector<16x8xf32>, vector<8x8xf32> -> vector<8x8xf32>
      %54 = arith.index_cast %arg10 : i32 to index
      %c0_28 = arith.constant 0 : index
      %c0_29 = arith.constant 0 : index
      %55 = vector.load %arg3[%54, %c0_28, %c0_29] : memref<8x8x8xf32, #tpu.memory_space<vmem>>, vector<1x8x8xf32>
      %56 = vector.shape_cast %55 : vector<1x8x8xf32> to vector<8x8xf32>
      %57 = arith.subf %53, %56 : vector<8x8xf32>
      %58 = arith.mulf %57, %57 : vector<8x8xf32>
      %cst_30 = arith.constant dense<0.000000e+00> : vector<8xf32>
      %59 = vector.multi_reduction <add>, %58, %cst_30 [0] : vector<8x8xf32> to vector<8xf32>
      %60 = vector.shape_cast %59 : vector<8xf32> to vector<1x8xf32>
      %61 = math.sqrt %60 : vector<1x8xf32>
      %cst_31 = arith.constant dense<0.000000e+00> : vector<1xf32>
      %62 = vector.multi_reduction <add>, %61, %cst_31 [1] : vector<1x8xf32> to vector<1xf32>
      %63 = vector.shape_cast %62 : vector<1xf32> to vector<1x1xf32>
      %64 = arith.addf %arg12, %63 : vector<1x1xf32>
      %65 = vector.extract_strided_slice %38 {offsets = [24, 0], sizes = [4, 16], strides = [1, 1]} : vector<32x16xf32> to vector<4x16xf32>
      %cst_32 = arith.constant dense<0.000000e+00> : vector<4x4xf32>
      %66 = tpu.matmul %65, %3, %cst_32 {dimension_numbers = #tpu.dot_dimension_numbers<[1], [0], [0], [1], [0, 0, 1, 1], [], []>} : vector<4x16xf32>, vector<16x4xf32>, vector<4x4xf32> -> vector<4x4xf32>
      %67 = arith.index_cast %arg10 : i32 to index
      %c0_33 = arith.constant 0 : index
      %c0_34 = arith.constant 0 : index
      %68 = vector.load %arg4[%67, %c0_33, %c0_34] : memref<8x4x4xf32, #tpu.memory_space<vmem>>, vector<1x4x4xf32>
      %69 = vector.shape_cast %68 : vector<1x4x4xf32> to vector<4x4xf32>
      %70 = arith.subf %66, %69 : vector<4x4xf32>
      %71 = arith.mulf %70, %70 : vector<4x4xf32>
      %cst_35 = arith.constant dense<0.000000e+00> : vector<4xf32>
      %72 = vector.multi_reduction <add>, %71, %cst_35 [0] : vector<4x4xf32> to vector<4xf32>
      %73 = vector.shape_cast %72 : vector<4xf32> to vector<1x4xf32>
      %74 = math.sqrt %73 : vector<1x4xf32>
      %cst_36 = arith.constant dense<0.000000e+00> : vector<1xf32>
      %75 = vector.multi_reduction <add>, %74, %cst_36 [1] : vector<1x4xf32> to vector<1xf32>
      %76 = vector.shape_cast %75 : vector<1xf32> to vector<1x1xf32>
      %77 = arith.addf %arg13, %76 : vector<1x1xf32>
      scf.yield %51, %64, %77 : vector<1x1xf32>, vector<1x1xf32>, vector<1x1xf32>
    }
    %c8_i32_9 = arith.constant 8 : i32
    %9 = tpu.iota {dimensions = array<i32: 1>} : vector<1x128xi32>
    %cst_10 = arith.constant 0.000000e+00 : f32
    %10 = vector.broadcast %cst_10 : f32 to vector<1x128xf32>
    %c0_i32_11 = arith.constant 0 : i32
    %11 = vector.broadcast %c0_i32_11 : i32 to vector<1x128xi32>
    %12 = arith.cmpi eq, %9, %11 : vector<1x128xi32>
    %cst_12 = arith.constant 0.000000e+00 : f32
    %13 = vector.shape_cast %8#0 : vector<1x1xf32> to vector<1x1xf32>
    %14 = vector.broadcast %13 : vector<1x1xf32> to vector<1x128xf32>
    %15 = vector.broadcast %cst_12 : f32 to vector<1x128xf32>
    %16 = arith.select %12, %14, %15 : vector<1x128xi1>, vector<1x128xf32>
    %17 = arith.addf %10, %16 : vector<1x128xf32>
    %c1_i32_13 = arith.constant 1 : i32
    %18 = vector.broadcast %c1_i32_13 : i32 to vector<1x128xi32>
    %19 = arith.cmpi eq, %9, %18 : vector<1x128xi32>
    %cst_14 = arith.constant 0.000000e+00 : f32
    %20 = vector.shape_cast %8#1 : vector<1x1xf32> to vector<1x1xf32>
    %21 = vector.broadcast %20 : vector<1x1xf32> to vector<1x128xf32>
    %22 = vector.broadcast %cst_14 : f32 to vector<1x128xf32>
    %23 = arith.select %19, %21, %22 : vector<1x128xi1>, vector<1x128xf32>
    %24 = arith.addf %17, %23 : vector<1x128xf32>
    %c2_i32 = arith.constant 2 : i32
    %25 = vector.broadcast %c2_i32 : i32 to vector<1x128xi32>
    %26 = arith.cmpi eq, %9, %25 : vector<1x128xi32>
    %cst_15 = arith.constant 0.000000e+00 : f32
    %27 = vector.shape_cast %8#2 : vector<1x1xf32> to vector<1x1xf32>
    %28 = vector.broadcast %27 : vector<1x1xf32> to vector<1x128xf32>
    %29 = vector.broadcast %cst_15 : f32 to vector<1x128xf32>
    %30 = arith.select %26, %28, %29 : vector<1x128xi1>, vector<1x128xf32>
    %31 = arith.addf %24, %30 : vector<1x128xf32>
    %c0_16 = arith.constant 0 : index
    %c0_17 = arith.constant 0 : index
    %c0_18 = arith.constant 0 : index
    %32 = vector.load %arg9[%c0_16, %c0_17, %c0_18] : memref<1x1x128xf32, #tpu.memory_space<vmem>>, vector<1x1x128xf32>
    %33 = vector.shape_cast %32 : vector<1x1x128xf32> to vector<1x128xf32>
    %34 = vector.shape_cast %31 : vector<1x128xf32> to vector<1x1x128xf32>
    tpu.vector_store %arg9[%c0_16, %c0_17, %c0_18], %34 {strides = array<i32>} : memref<1x1x128xf32, #tpu.memory_space<vmem>>, vector<1x1x128xf32>,
    return
  }
  func.func @transform_0(%arg0: i32) -> (i32, i32, i32) {
    %c0_i32 = arith.constant 0 : i32
    %c0_i32_0 = arith.constant 0 : i32
    %c0_i32_1 = arith.constant 0 : i32
    return %arg0, %c0_i32, %c0_i32_0 : i32, i32, i32
  }
  func.func @transform_1(%arg0: i32) -> (i32, i32, i32) {
    %c0_i32 = arith.constant 0 : i32
    %c0_i32_0 = arith.constant 0 : i32
    %c0_i32_1 = arith.constant 0 : i32
    return %arg0, %c0_i32, %c0_i32_0 : i32, i32, i32
  }
  func.func @transform_2(%arg0: i32) -> (i32, i32, i32) {
    %c0_i32 = arith.constant 0 : i32
    %c0_i32_0 = arith.constant 0 : i32
    %c0_i32_1 = arith.constant 0 : i32
    return %arg0, %c0_i32, %c0_i32_0 : i32, i32, i32
  }
  func.func @transform_3(%arg0: i32) -> (i32, i32, i32) {
    %c0_i32 = arith.constant 0 : i32
    %c0_i32_0 = arith.constant 0 : i32
    %c0_i32_1 = arith.constant 0 : i32
    return %arg0, %c0_i32, %c0_i32_0 : i32, i32, i32
  }
  func.func @transform_4(%arg0: i32) -> (i32, i32) {
    %c0_i32 = arith.constant 0 : i32
    %c0_i32_0 = arith.constant 0 : i32
    %c0_i32_1 = arith.constant 0 : i32
    return %c0_i32, %c0_i32_0 : i32, i32
  }
  func.func @transform_5(%arg0: i32) -> (i32, i32) {
    %c0_i32 = arith.constant 0 : i32
    %c0_i32_0 = arith.constant 0 : i32
    %c0_i32_1 = arith.constant 0 : i32
    return %c0_i32, %c0_i32_0 : i32, i32
  }
  func.func @transform_6(%arg0: i32) -> (i32, i32) {
    %c0_i32 = arith.constant 0 : i32
    %c0_i32_0 = arith.constant 0 : i32
    %c0_i32_1 = arith.constant 0 : i32
    return %c0_i32, %c0_i32_0 : i32, i32
  }
  func.func @transform_7(%arg0: i32) -> (i32, i32) {
    %c0_i32 = arith.constant 0 : i32
    %c0_i32_0 = arith.constant 0 : i32
    %c0_i32_1 = arith.constant 0 : i32
    return %c0_i32, %c0_i32_0 : i32, i32
  }
  func.func @transform_8(%arg0: i32) -> (i32, i32, i32) {
    %c0_i32 = arith.constant 0 : i32
    %c0_i32_0 = arith.constant 0 : i32
    %c0_i32_1 = arith.constant 0 : i32
    return %arg0, %c0_i32, %c0_i32_0 : i32, i32, i32
  }
}

</mosaic_0001>

<bundles_post_ra>
// kernel: multiscale_loss.1
= control target key start
LH: loop header
LB: loop body
LE: loop exit
PB: predicated region body
PF: predicated region fallthrough
CT: control target
= control target key end

     0   :  { %13 = vsyncpa [#allocation3], 0  ;;  %s1187_s0 = inlined_call_operand.hbm [shape: f32[8,16,16], index: 0, kind: input, shape index: {}]   ;;  %s1188_s1 = inlined_call_operand.hbm [shape: f32[8,16,16], index: 1, kind: input, shape index: {}]   ;;  %s1189_s2 = inlined_call_operand.hbm [shape: f32[8,8,8], index: 2, kind: input, shape index: {}]   ;;  %s1190_s3 = inlined_call_operand.hbm [shape: f32[8,4,4], index: 3, kind: input, shape index: {}]   ;;  %s1191_s4 = inlined_call_operand.vmem [shape: f32[32,16], index: 4, kind: input, shape index: {}]   ;;  %s1192_s5 = inlined_call_operand.hbm [shape: f32[16,16], index: 5, kind: input, shape index: {}]   ;;  %s1193_s6 = inlined_call_operand.hbm [shape: f32[16,8], index: 6, kind: input, shape index: {}]   ;;  %s1194_s7 = inlined_call_operand.hbm [shape: f32[16,4], index: 7, kind: input, shape index: {}]   ;;  %s1195_s8 = inlined_call_operand.vmem [shape: f32[1,1,128], index: 8, kind: output, shape index: {}]  }
   0x1   :  { %14 = vsyncpa [#allocation5], 0 }
   0x2   :  { %15 = vsyncpa [#allocation8], 0 }
   0x3   :  { %16 = vsyncpa [#allocation11], 0  ;;  %s908_s27 = smov [#allocation4]   ;;  %s909_s29 = smov [#allocation7]  }
   0x4   :  { %s34_s28 = sshll.u32 %s908_s27, 4  ;;  %s58_s30 = sshll.u32 %s909_s29, 4  ;;  %s35_s28 = int_to_ptr.vmem [resolvable:$true] %s34_s28  ;;  %s967_s30 = int_to_ptr.vmem [resolvable:$true] %s58_s30 }
   0x5   :  { %s714_s11 = scalar_lea.hbm %s1188_s1, 2048 }
   0x6   :  { %p715_p0 = scmp.ne.s32.totalorder %s1188_s1, %s714_s11  ;;  %p718_p1 = scmp.lt.u32.totalorder %s714_s11, %s1188_s1 }
   0x8   :  { %p720_p2 = pnand %p718_p1, %p715_p0 }
   0xa   :  { %723 = shalt.err (!%p720_p2)
}
   0xb   :  { %s724_s16 = scalar_lea.vmem %s35_s28, 2048  ;;  %p729_p4 = scmp.lt.s32.totalorder %s35_s28, %s35_s28 }
   0xc   :  { %p725_p3 = scmp.ne.s32.totalorder %s35_s28, %s724_s16  ;;  %p730_p5 = scmp.lt.s32.totalorder %s724_s16, %s724_s16 }
   0xe   :  { %p731_p6 = por %p730_p5, %p729_p4 }
  0x10   :  { %p732_p7 = pnand %p731_p6, %p725_p3 }
  0x12   :  { %735 = shalt.err (!%p732_p7)
}
  0x13   :  { %s910_s17 = smov 128   ;;  %s911_s18 = smov 8  }
  0x14   :  { %40 = dma.hbm_to_vmem [thread:$0]  %s1188_s1, 2048, %s35_s28, [#allocation5], %s910_s17, %s910_s17, %s911_s18  }
  0x15   :  { %s736_s23 = scalar_lea.hbm %s1190_s3, 512 }
  0x16   :  { %p737_p8 = scmp.ne.s32.totalorder %s1190_s3, %s736_s23  ;;  %p740_p9 = scmp.lt.u32.totalorder %s736_s23, %s1190_s3 }
  0x18   :  { %p742_p10 = pnand %p740_p9, %p737_p8 }
  0x1a   :  { %745 = shalt.err (!%p742_p10)
}
  0x1b   :  { %s746_s29 = scalar_lea.vmem %s967_s30, 512  ;;  %p751_p12 = scmp.lt.s32.totalorder %s967_s30, %s967_s30 }
  0x1c   :  { %p747_p11 = scmp.ne.s32.totalorder %s967_s30, %s746_s29  ;;  %p752_p13 = scmp.lt.s32.totalorder %s746_s29, %s746_s29 }
  0x1e   :  { %p753_p0 = por %p752_p13, %p751_p12 }
  0x20   :  { %p754_p1 = pnand %p753_p0, %p747_p11 }
  0x22   :  { %757 = shalt.err (!%p754_p1)
}
  0x23   :  { %s912_s1 = smov 64   ;;  %s913_s28 = smov 4  }
  0x24   :  { %64 = dma.hbm_to_vmem [thread:$0]  %s1190_s3, 512, %s967_s30, [#allocation8], %s912_s1, %s912_s1, %s913_s28  }
  0x25   :  { %s914_s11 = smov [#allocation10]   ;;  %s915_s13 = smov [#allocation2]  }
  0x26   :  { %s84_s12 = sshll.u32 %s914_s11, 4  ;;  %s22_s14 = sshll.u32 %s915_s13, 4  ;;  %s85_s12 = int_to_ptr.vmem [resolvable:$true] %s84_s12  ;;  %s1001_s14 = int_to_ptr.vmem [resolvable:$true] %s22_s14 }
  0x27   :  { %s758_s19 = scalar_lea.hbm %s1193_s6, 256 }
  0x28   :  { %p759_p2 = scmp.ne.s32.totalorder %s1193_s6, %s758_s19  ;;  %p762_p3 = scmp.lt.u32.totalorder %s758_s19, %s1193_s6 }
  0x2a   :  { %p764_p4 = pnand %p762_p3, %p759_p2 }
  0x2c   :  { %767 = shalt.err (!%p764_p4)
}
  0x2d   :  { %s768_s3 = scalar_lea.vmem %s85_s12, 256  ;;  %p773_p6 = scmp.lt.s32.totalorder %s85_s12, %s85_s12 }
  0x2e   :  { %p769_p5 = scmp.ne.s32.totalorder %s85_s12, %s768_s3  ;;  %p774_p7 = scmp.lt.s32.totalorder %s768_s3, %s768_s3 }
  0x30   :  { %p775_p8 = por %p774_p7, %p773_p6 }
  0x32   :  { %p776_p9 = pnand %p775_p8, %p769_p5 }
  0x34   :  { %779 = shalt.err (!%p776_p9)
}
  0x35   :  { %90 = dma.hbm_to_vmem [thread:$0]  %s1193_s6, 256, %s85_s12, [#allocation11], %s910_s17, %s910_s17, %s911_s18  }
  0x36   :  { %s780_s27 = scalar_lea.hbm %s1187_s0, 2048 }
  0x37   :  { %p781_p10 = scmp.ne.s32.totalorder %s1187_s0, %s780_s27  ;;  %p784_p11 = scmp.lt.u32.totalorder %s780_s27, %s1187_s0 }
  0x39   :  { %p786_p12 = pnand %p784_p11, %p781_p10 }
  0x3b   :  { %789 = shalt.err (!%p786_p12)
}
  0x3c   :  { %s790_s10 = scalar_lea.vmem %s1001_s14, 2048  ;;  %p795_p0 = scmp.lt.s32.totalorder %s1001_s14, %s1001_s14 }
  0x3d   :  { %p791_p13 = scmp.ne.s32.totalorder %s1001_s14, %s790_s10  ;;  %p796_p1 = scmp.lt.s32.totalorder %s790_s10, %s790_s10 }
  0x3f   :  { %p797_p2 = por %p796_p1, %p795_p0 }
  0x41   :  { %p798_p3 = pnand %p797_p2, %p791_p13 }
  0x43   :  { %801 = shalt.err (!%p798_p3)
}
  0x44   :  { %28 = dma.hbm_to_vmem [thread:$0]  %s1187_s0, 2048, %s1001_s14, [#allocation3], %s910_s17, %s910_s17, %s911_s18  }
  0x45   :  { %s916_s12 = smov [#allocation6]   ;;  %s917_s15 = smov [#allocation9]  }
  0x46   :  { %s46_s13 = sshll.u32 %s916_s12, 4  ;;  %s72_s16 = sshll.u32 %s917_s15, 4  ;;  %s47_s13 = int_to_ptr.vmem [resolvable:$true] %s46_s13  ;;  %s1038_s16 = int_to_ptr.vmem [resolvable:$true] %s72_s16 }
  0x47   :  { %s802_s21 = scalar_lea.hbm %s1189_s2, 1024 }
  0x48   :  { %p803_p4 = scmp.ne.s32.totalorder %s1189_s2, %s802_s21  ;;  %p806_p5 = scmp.lt.u32.totalorder %s802_s21, %s1189_s2 }
  0x4a   :  { %p808_p6 = pnand %p806_p5, %p803_p4 }
  0x4c   :  { %811 = shalt.err (!%p808_p6)
}
  0x4d   :  { %s812_s0 = scalar_lea.vmem %s47_s13, 1024  ;;  %p817_p8 = scmp.lt.s32.totalorder %s47_s13, %s47_s13 }
  0x4e   :  { %p813_p7 = scmp.ne.s32.totalorder %s47_s13, %s812_s0  ;;  %p818_p9 = scmp.lt.s32.totalorder %s812_s0, %s812_s0 }
  0x50   :  { %p819_p10 = por %p818_p9, %p817_p8 }
  0x52   :  { %p820_p11 = pnand %p819_p10, %p813_p7 }
  0x54   :  { %823 = shalt.err (!%p820_p11)
}
  0x55   :  { %52 = dma.hbm_to_vmem [thread:$0]  %s1189_s2, 1024, %s47_s13, [#allocation5], %s910_s17, %s910_s17, %s911_s18  }
  0x56   :  { %s824_s27 = scalar_lea.hbm %s1192_s5, 256 }
  0x57   :  { %p825_p12 = scmp.ne.s32.totalorder %s1192_s5, %s824_s27  ;;  %p828_p13 = scmp.lt.u32.totalorder %s824_s27, %s1192_s5 }
  0x59   :  { %p830_p0 = pnand %p828_p13, %p825_p12 }
  0x5b   :  { %833 = shalt.err (!%p830_p0)
}
  0x5c   :  { %s834_s10 = scalar_lea.vmem %s1038_s16, 256  ;;  %p839_p2 = scmp.lt.s32.totalorder %s1038_s16, %s1038_s16 }
  0x5d   :  { %p835_p1 = scmp.ne.s32.totalorder %s1038_s16, %s834_s10  ;;  %p840_p3 = scmp.lt.s32.totalorder %s834_s10, %s834_s10 }
  0x5f   :  { %p841_p4 = por %p840_p3, %p839_p2 }
  0x61   :  { %p842_p5 = pnand %p841_p4, %p835_p1 }
  0x63   :  { %845 = shalt.err (!%p842_p5)
}
  0x64   :  { %78 = dma.hbm_to_vmem [thread:$0]  %s1192_s5, 256, %s1038_s16, [#allocation8], %s910_s17, %s910_s17, %s911_s18  }
  0x65   :  { %s918_s11 = smov [#allocation12]   ;;  %s846_s19 = scalar_lea.hbm %s1194_s7, 256 }
  0x66   :  { %s96_s12 = sshll.u32 %s918_s11, 4  ;;  %p847_p6 = scmp.ne.s32.totalorder %s1194_s7, %s846_s19  ;;  %s97_s12 = int_to_ptr.vmem [resolvable:$true] %s96_s12 }
  0x67   :  { %p850_p7 = scmp.lt.u32.totalorder %s846_s19, %s1194_s7 }
  0x69   :  { %p852_p8 = pnand %p850_p7, %p847_p6 }
  0x6b   :  { %855 = shalt.err (!%p852_p8)
}
  0x6c   :  { %s856_s3 = scalar_lea.vmem %s97_s12, 256  ;;  %p861_p10 = scmp.lt.s32.totalorder %s97_s12, %s97_s12 }
  0x6d   :  { %p857_p9 = scmp.ne.s32.totalorder %s97_s12, %s856_s3  ;;  %p862_p11 = scmp.lt.s32.totalorder %s856_s3, %s856_s3 }
  0x6f   :  { %p863_p12 = por %p862_p11, %p861_p10 }
  0x71   :  { %p864_p13 = pnand %p863_p12, %p857_p9 }
  0x73   :  { %867 = shalt.err (!%p864_p13)
}
  0x74   :  { %102 = dma.hbm_to_vmem [thread:$0]  %s1194_s7, 256, %s97_s12, [#allocation11], %s910_s17, %s910_s17, %s911_s18  }
  0x75   :  { %884 = dma.done.wait [#allocation3], 2048  }
  0x76   :  { %885 = vsyncadd [#allocation3], 4294965248 }
  0x77   :  { %886 = dma.done.wait [#allocation5], 3072  }
  0x78   :  { %887 = vsyncadd [#allocation5], 4294964224 }
  0x79   :  { %888 = dma.done.wait [#allocation8], 768  }
  0x7a   :  { %889 = vsyncadd [#allocation8], 4294966528 }
  0x7b   :  { %890 = dma.done.wait [#allocation11], 512  }
  0x7c   :  { %891 = vsyncadd [#allocation11], 4294966784  ;;  %v1093_v0 = vld [vmem:[%s1191_s4] sm:$0xff]  ;;  %v1098_v1 = vld [vmem:[%s1191_s4 + $0x8] sm:$0xff]  ;;  %v1122_v10 = vmov 0.0   ;;  %v1124_v11 = vmov 0.0  }
  0x7d   :  { %v1103_v2 = vld [vmem:[%s1191_s4 + $0x10] sm:$0xff]  ;;  %v1108_v3 = vld [vmem:[%s1191_s4 + $0x18] sm:$0xff]  ;;  %v1110_v4 = vld [vmem:[#allocation9] sm:$0xff]  ;;  %v1126_v12 = vmov 0.0   ;;  %s1128_s4 = smov 0  }
  0x7e   :  { %v1112_v5 = vld [vmem:[#allocation9 + $0x8] sm:$0xff]  ;;  %v1114_v6 = vld [vmem:[#allocation10] sm:$0xff]  ;;  %v1116_v7 = vld [vmem:[#allocation10 + $0x8] sm:$0xff] }
  0x7f   :  { %v1118_v8 = vld [vmem:[#allocation12] sm:$0xff]  ;;  %v1120_v9 = vld [vmem:[#allocation12 + $0x8] sm:$0xff] }
  0x80 LB: > { %vm147_vm0 = vcmask 130048   ;;  %v652_v13 = vpack.c.bf16 %v1112_v5, %v1110_v4  ;;  %s590_s26 = sshll.u32 %s906_s4, 4  ;;  %v660_v17 = vpack.c.bf16 %v1120_v9, %v1118_v8  ;;  %v919_v18 = vmov 0.0|0.0   ;;  %s600_s29 = sshll.u32 %s906_s4, 2  ;;  %s906_s4 = sphi %s1128_s4, %s139_s4   ;;  %v902_v12 = vphi %v1126_v12, %v1198_v12   ;;  %v898_v11 = vphi %v1124_v11, %v1197_v11   ;;  %v894_v10 = vphi %v1122_v10, %v1196_v10  }
  0x81   : > { %621 = vmatprep.mubr.msk.f32.mxu0 %vm147_vm0, %v1093_v0  ;;  %s144_s27 = scalar_lea.vmem [#allocation2], %s590_s26  ;;  %vm920_vm1 = vmmov 0   ;;  %v921_v19 = vmov 0.0   ;;  %v657_v21 = vpack.c.bf16 %v1116_v7, %v1114_v6  ;;  %s598_s1 = sshll.u32 %s906_s4, 3  ;;  %vm528_vm2 = vcmask 27648  }
  0x82   : > { %653 = vmatprep.subr.bf16.mxu1 %v652_v13  ;;  %v145_v14 = vld [vmem:[%s144_s27] sm:$0xff]  ;;  %v146_v15 = vld [vmem:[%s144_s27 + $0x8] sm:$0xff]  ;;  %s326_s28 = scalar_lea.vmem [#allocation4], %s590_s26  ;;  %s524_s9 = scalar_lea.vmem [#allocation7], %s600_s29  ;;  %vm431_vm3 = vcmask 64512   ;;  %vm543_vm5 = vcmask 31744  }
  0x83   : > { %655 = vmatpush3.bf16.msra.mxu1 %v652_v13  ;;  %v648_v16 = vpack.c.bf16 %v146_v15, %v145_v14  ;;  %v328_v25 = vld [vmem:[%s326_s28 + $0x8] sm:$0xff]  ;;  %v327_v26 = vld [vmem:[%s326_s28] sm:$0xff]  ;;  %s427_s10 = scalar_lea.vmem [#allocation6], %s598_s1  ;;  %s139_s4 = sadd.s32 1, %s906_s4  }
  0x84   : > { %656 = vmatprep.subr.bf16.mxu1 %v919_v18  ;;  %v525_v28 = vld [vmem:[%s524_s9] sm:$0xf]  ;;  %p136_p0 = scmp.ge.s32.totalorder %s139_s4, 8  }
  0x85   : > { %649 = vmatprep.subr.bf16.mxu0 %v648_v16  ;;  %v428_v33 = vld [vmem:[%s427_s10] sm:$0xff] }
  0x86   : > { %651 = vmatpush3.bf16.msra.mxu0 %v648_v16 }
  0x87   : > { %659 = vmatprep.subr.bf16.mxu0 %v919_v18 }
  0x89   : > { %622 = vmatmul.mubr.msk.f32.vlgmr.msra.gmra.mrb[0].mxu0 %vm147_vm0, %v1098_v1 }
  0x8a   : > { %624 = vmatprep.mubr.msk.f32.mxu0 %vm147_vm0, %v1103_v2  ;;  %661 = vmatpush3.bf16.msra.mxu0 %v660_v17 }
  0x8d   : > { %625 = vmatmul.mubr.msk.f32.gmra.mrb[2].mxu0 %vm147_vm0, %v1108_v3 }
  0x8e   : > { %645 = vmatprep.mubr.msk.f32.mxu0 %vm920_vm1, %v921_v19 }
 0x15c   : > { %v623_v20 = vpop.f32.mrb[0].mxu0 }
 0x15d   : > { %v226_v22 = vpop.f32.mrb[1].mxu0 }
 0x15e   : > { %631 = vmatprep.mubr.msk.f32.mxu1 %vm147_vm0, %v226_v22 }
 0x15f   : > { %632 = vmatmul.mubr.msk.f32.vlgmr.msra.gmra.mrb[0].mxu1 %vm147_vm0, %v623_v20 }
 0x160   : > { %v626_v23 = vpop.f32.mrb[2].mxu0  ;;  %658 = vmatpush3.bf16.msra.mxu1 %v657_v21  ;;  %638 = vmatprep.mubr.msk.f32.mxu1 %vm920_vm1, %v921_v19 }
 0x161   : > { %646 = vmatmul.mubr.msk.f32.vlgmr.msra.gmra.mrb[4].mxu0 %vm147_vm0, %v626_v23  ;;  %v236_v24 = vpop.f32.mrb[3].mxu0 }
 0x163   : > { %639 = vmatmul.mubr.msk.f32.vlgmr.msra.gmra.mrb[2].mxu1 %vm147_vm0, %v236_v24 }
 0x232   : > { %v633_v27 = vpop.f32.mrb[0].mxu1 }
 0x233   : > { %v330_v29 = vsub.f32 %v633_v27, %v328_v25  ;;  %v317_v30 = vpop.f32.mrb[1].mxu1 }
 0x234   : > { %v329_v31 = vsub.f32 %v317_v30, %v327_v26  ;;  %v519_v32 = vpop.f32.mrb[4].mxu0 }
 0x235   : > { %v332_v34 = vmul.f32 %v330_v29, %v330_v29  ;;  %v526_v35 = vsub.f32 %v519_v32, %v525_v28  ;;  %v647_v36 = vpop.f32.mrb[5].mxu0 }
 0x236   : > { %v331_v37 = vmul.f32 %v329_v31, %v329_v31  ;;  %v422_v38 = vpop.f32.mrb[2].mxu1 }
 0x237   : > { %v334_v39 = vsel %vm147_vm0, %v332_v34, 0.0  ;;  %v527_v40 = vmul.f32 %v526_v35, %v526_v35  ;;  %v429_v41 = vsub.f32 %v422_v38, %v428_v33  ;;  %v640_v42 = vpop.f32.mrb[3].mxu1 }
 0x238   : > { %v333_v43 = vsel %vm147_vm0, %v331_v37, 0.0 }
 0x239   : > { %v335_v44 = vadd.f32 %v334_v39, %v333_v43  ;;  %v529_v45 = vsel %vm528_vm2, %v527_v40, 0.0  ;;  %v430_v46 = vmul.f32 %v429_v41, %v429_v41  ;;  %v548_v39 = vlaneseq (%p136_p0) }
 0x23a   : > { %v530_v47 = vrot.slane %v529_v45, 4 }
 0x23b   : > { %v336_v48 = vrot.slane %v335_v44, 4  ;;  %v432_v49 = vsel %vm431_vm3, %v430_v46, 0.0  ;;  %v549_v40 = vand.u32 (%p136_p0), 127, %v548_v39 }
 0x23c   : > { %v531_v50 = vadd.f32 %v530_v47, %v529_v45  ;;  %v433_v51 = vrot.slane %v432_v49, 4 }
 0x23d   : > { %v337_v52 = vadd.f32 %v336_v48, %v335_v44  ;;  %vm550_vm11 = vcmp.eq.s32.totalorder (%p136_p0), %v549_v40, 0  ;;  %vm553_vm12 = vcmp.eq.s32.totalorder (%p136_p0), %v549_v40, 1  ;;  %vm556_vm13 = vcmp.eq.s32.totalorder (%p136_p0), %v549_v40, 2 }
 0x23e   : > { %v532_v53 = vrot.slane %v531_v50, 2  ;;  %v434_v54 = vadd.f32 %v433_v51, %v432_v49 }
 0x23f   : > { %v338_v55 = vrot.slane %v337_v52, 2 }
 0x240   : > { %v533_v56 = vadd.f32 %v532_v53, %v531_v50  ;;  %v435_v57 = vrot.slane %v434_v54, 2 }
 0x241   : > { %v339_v58 = vadd.f32 %v338_v55, %v337_v52 }
 0x242   : > { %v534_v59 = vrot.slane %v533_v56, 1  ;;  %v436_v60 = vadd.f32 %v435_v57, %v434_v54 }
 0x243   : > { %v340_v61 = vrot.slane %v339_v58, 1 }
 0x244   : > { %v535_v62 = vadd.f32 %v534_v59, %v533_v56  ;;  %v437_v63 = vrot.slane %v436_v60, 1 }
 0x245   : > { %v341_v13 = vadd.f32 %v340_v61, %v339_v58 }
 0x246   : > { %708 = vrsqrt.f32 %v535_v62  ;;  %v438_v14 = vadd.f32 %v437_v63, %v436_v60  ;;  %vm538_vm4 = vcmp.eq.f32.partialorder %v535_v62, inf  ;;  %v541_v18 = vand.u32 2147483648, %v535_v62 }
 0x247   : > { %710 = vrsqrt.f32 %v341_v13  ;;  %vm540_vm6 = vcmp.eq.f32.partialorder %v535_v62, 0.0  ;;  %vm344_vm7 = vcmp.eq.f32.partialorder %v341_v13, inf  ;;  %v347_v21 = vand.u32 2147483648, %v341_v13 }
 0x248   : > { %712 = vrsqrt.f32 %v438_v14  ;;  %vm346_vm8 = vcmp.eq.f32.partialorder %v341_v13, 0.0  ;;  %vm441_vm9 = vcmp.eq.f32.partialorder %v438_v14, inf  ;;  %v444_v29 = vand.u32 2147483648, %v438_v14 }
 0x249   : > { %vm443_vm10 = vcmp.eq.f32.partialorder %v438_v14, 0.0 }
 0x250   : > { %v709_v15 = vpop.eup %708 }
 0x251   : > { %v711_v16 = vpop.eup %710  ;;  %v537_v17 = vmul.f32 %v709_v15, %v535_v62 }
 0x252   : > { %v343_v19 = vmul.f32 %v711_v16, %v341_v13  ;;  %v713_v22 = vpop.eup %712 }
 0x253   : > { %v539_v20 = vsel %vm538_vm4, %v535_v62, %v537_v17  ;;  %v440_v27 = vmul.f32 %v713_v22, %v438_v14 }
 0x254   : > { %v542_v23 = vsel %vm540_vm6, %v541_v18, %v539_v20  ;;  %v345_v24 = vsel %vm344_vm7, %v341_v13, %v343_v19 }
 0x255   : > { %v544_v25 = vsel %vm543_vm5, %v542_v23, 0.0  ;;  %v348_v26 = vsel %vm346_vm8, %v347_v21, %v345_v24  ;;  %v442_v30 = vsel %vm441_vm9, %v438_v14, %v440_v27 }
 0x256   : > { %545 = vadd.xlane.f32.xlu1 %v544_v25  ;;  %v349_v28 = vsel %vm147_vm0, %v348_v26, 0.0  ;;  %v445_v31 = vsel %vm443_vm10, %v444_v29, %v442_v30 }
 0x257   : > { %350 = vadd.xlane.f32.xlu0 %v349_v28  ;;  %v446_v32 = vsel %vm431_vm3, %v445_v31, 0.0 }
 0x25b   : > { %447 = vadd.xlane.f32.xlu0 %v446_v32 }
 0x2e3   : > { %v546_v33 = vpop.xlane.xlu1 %545 }
 0x2e4   : > { %v547_v34 = vadd.f32 %v894_v10, %v546_v33   ;;  %v351_v35 = vpop.xlane.xlu0 %350 }
 0x2e5   : > { %v352_v36 = vadd.f32 %v902_v12, %v351_v35   ;;  %138 = sbr.rel (!%p136_p0) target bundleno = 128 (0x80), region = 91 }
 0x2e6   : > { %v1196_v10 = vmov %v547_v34  ;;  %v557_v42 = vsel (%p136_p0), %vm556_vm13, %v547_v34, 0.0 }
 0x2e7   : > { %v1198_v12 = vmov %v352_v36 }
 0x2e8   : > { %v448_v37 = vpop.xlane.xlu0 %447  ;;  %v551_v12 = vsel (%p136_p0), %vm550_vm11, %v352_v36, 0.0 }
 0x2e9   : > { %v449_v38 = vadd.f32 %v898_v11, %v448_v37  }
 0x2eb   : > { %v1197_v11 = vmov %v449_v38  ;;  %v554_v41 = vsel (%p136_p0), %vm553_vm12, %v449_v38, 0.0 }
 0x2ec   :  { %v555_v43 = vadd.f32 %v554_v41, %v551_v12 }
 0x2ee   :  { %v558_v44 = vadd.f32 %v557_v42, %v555_v43 }
 0x2f0   :  { %559 = vst [vmem:[%s1195_s8] sm:$0x1] %v558_v44 }
 0x2f1   :  { %564 = vsyncpa [#allocation3], 1 }
 0x2f2   :  { %565 = vsyncpa [#allocation5], 1 }
 0x2f3   :  { %566 = vsyncpa [#allocation8], 1 }
 0x2f4   :  { %567 = vsyncpa [#allocation11], 1 }

</bundles_post_ra>
